<compile_context>
chip_gen: v5e
topology: v5e:2x2
jax: 0.10.0
libtpu: 0.0.40
codegen_flags: <defaults>
</compile_context>

<pallas_src>
import functools
import math

import jax
import jax.numpy as jnp
from jax.experimental import pallas as pl
from jax.experimental.pallas import tpu as pltpu


def _ceil_to(x: int, m: int) -> int:
    return -(-x // m) * m


def _edm_kernel(x_ref, o_ref, *, half, coef):
    """Simple path (C >= 128, or grouping not applicable).

    x_ref: (tn, 1) timesteps, o_ref: (tn, C) output block.
    Single fused transcendental pass: cos half == cos(t), sin half == cos(t - pi/2).
    """
    x = x_ref[...].astype(jnp.float32)                                   # (tn, 1)
    c_idx = jax.lax.broadcasted_iota(jnp.int32, (1, 2 * half), 1)        # lane 0..C-1
    k = jnp.where(c_idx >= half, c_idx - half, c_idx).astype(jnp.float32)
    f_full = jnp.exp(k * coef)                                           # (1, C) == [f, f]
    phase = jnp.where(c_idx >= half, jnp.float32(-math.pi / 2.0), jnp.float32(0.0))
    o_ref[...] = jnp.cos(x * f_full + phase).astype(o_ref.dtype)


def _edm_grouped_kernel(x_ref, f_ref, o_ref, *, half, g):
    """Lane-dense path for C < 128: g = 128 // C timesteps per 128-lane output row.

    x_ref: (tn, g), f_ref: (g, 128) banded constant, o_ref: (tn, 128).
    The row->lane regrouping plus outer product is one matmul on the idle MXU:
      t[i, j*C + c] = x[i, j] * f_full[c]
    """
    C = 2 * half
    x = x_ref[...].astype(jnp.float32)                                   # (tn, g)
    t = jnp.dot(x, f_ref[...], preferred_element_type=jnp.float32,
                precision=jax.lax.Precision.HIGHEST)                     # (tn, g*C)
    l = jax.lax.broadcasted_iota(jnp.int32, (1, g * C), 1)
    phase = jnp.where((l % C) >= half, jnp.float32(-math.pi / 2.0), jnp.float32(0.0))
    o_ref[...] = jnp.cos(t + phase).astype(o_ref.dtype)


def _pick_tile_rows(n_rows, out_lanes, out_itemsize, target_bytes):
    """Rows per grid step from a VMEM byte budget.

    Counts the output row plus the input row's 128-lane padding (the (tn, k)
    f32 input block occupies 128 lanes per row in VMEM regardless of k).
    Rounded to the 8-sublane granule; if the whole problem would fit in one
    block, split into >= 2 grid steps so the 'parallel' axis can feed both
    TensorCores on v7x.
    """
    row_bytes = out_lanes * out_itemsize + 128 * 4
    tn = max(8, (int(target_bytes) // row_bytes) // 8 * 8)
    if tn >= _ceil_to(n_rows, 8):
        tn = _ceil_to(-(-n_rows // 2), 8) if n_rows > 8 else 8
    return tn


def positional_embedding_edm(x, num_channels, max_positions=10000, endpoint=False,
                             *, out_dtype=None, target_block_bytes=2 << 20):
    """x: (N,) array of timesteps. Returns (N, num_channels).

    out_dtype: output dtype; defaults to x.dtype when x is floating, else
    float32. All math is done in float32 regardless.
    target_block_bytes: approximate single-buffer VMEM budget per grid step.
    """
    assert num_channels % 2 == 0, "num_channels must be even"
    half = num_channels // 2
    assert not (endpoint and half == 1), \
        "endpoint=True with num_channels == 2 divides by zero (matches PyTorch NaN)"
    (n,) = x.shape
    C = num_channels

    if out_dtype is None:
        out_dtype = x.dtype if jnp.issubdtype(x.dtype, jnp.floating) else jnp.float32
    out_dtype = jnp.dtype(out_dtype)
    out_itemsize = out_dtype.itemsize

    # f_full[k] = exp(k * coef) == (1/max_positions) ** (k / (half - endpoint))
    coef = -math.log(float(max_positions)) / (half - (1 if endpoint else 0))

    cost = pl.CostEstimate(
        flops=2 * n * C,
        transcendentals=n * C,
        bytes_accessed=n * x.dtype.itemsize + n * C * out_itemsize,
    )
    compiler_params = pltpu.CompilerParams(dimension_semantics=("parallel",))

    g = (128 // C) if C < 128 else 1
    use_grouped = (C < 128) and (128 % C == 0) and (g > 1) and (n % g == 0)

    if use_grouped:
        # Lane-dense path: pack g rows into one 128-lane output row.
        rows = n // g
        lanes = g * C                                      # == 128
        tn = _pick_tile_rows(rows, lanes, out_itemsize, target_block_bytes)

        freqs = jnp.exp(jnp.arange(half, dtype=jnp.float32) * coef)      # (half,)
        f_full = jnp.concatenate([freqs, freqs]).reshape(1, C)           # (1, C)
        F = jnp.kron(jnp.eye(g, dtype=jnp.float32), f_full)              # (g, 128) banded

        x_g = x.reshape(rows, g)
        out_g = pl.pallas_call(
            functools.partial(_edm_grouped_kernel, half=half, g=g),
            out_shape=jax.ShapeDtypeStruct((rows, lanes), out_dtype),
            grid=(pl.cdiv(rows, tn),),
            in_specs=[
                pl.BlockSpec((tn, g), lambda i: (i, 0)),
                pl.BlockSpec((g, lanes), lambda i: (0, 0)),   # constant block: DMA'd once
            ],
            out_specs=pl.BlockSpec((tn, lanes), lambda i: (i, 0)),
            compiler_params=compiler_params,
            cost_estimate=cost,
        )(x_g, F)
        return out_g.reshape(n, C)                         # row-major reshape: free

    # Simple path (C >= 128 already lane-dense, or grouping doesn't apply).
    tn = _pick_tile_rows(n, C, out_itemsize, target_block_bytes)
    x2d = x.reshape(n, 1)
    out = pl.pallas_call(
        functools.partial(_edm_kernel, half=half, coef=coef),
        out_shape=jax.ShapeDtypeStruct((n, C), out_dtype),
        grid=(pl.cdiv(n, tn),),                            # no pad; masked last block
        in_specs=[pl.BlockSpec((tn, 1), lambda i: (i, 0))],
        out_specs=pl.BlockSpec((tn, C), lambda i: (i, 0)),
        compiler_params=compiler_params,
        cost_estimate=cost,
    )(x2d)
    return out


def _reference(x, num_channels, max_positions=10000, endpoint=False):
    """Pure-JAX mirror of the PyTorch module (spec)."""
    half = num_channels // 2
    freqs = jnp.arange(half, dtype=jnp.float32)
    freqs = freqs / (half - (1 if endpoint else 0))
    freqs = (1.0 / max_positions) ** freqs
    t = x.astype(jnp.float32)[:, None] * freqs[None, :]
    out = jnp.concatenate([jnp.cos(t), jnp.sin(t)], axis=1)
    return out.astype(x.dtype if jnp.issubdtype(x.dtype, jnp.floating) else jnp.float32)


if __name__ == "__main__":
    num_channels = 32

    # (1) Lane-dense grouped path: C=32 < 128, g=4, N % g == 0.
    x1 = jax.random.uniform(jax.random.PRNGKey(0), (16,), dtype=jnp.float32) * 100.0
    o1 = jax.block_until_ready(positional_embedding_edm(x1, num_channels))
    r1 = _reference(x1, num_channels)
    assert o1.shape == (16, num_channels), o1.shape
    assert jnp.allclose(o1, r1, atol=1e-3, rtol=1e-3), "grouped path mismatch"

    # (2) Simple path with a partial (masked-writeback) last block: N=19 is not
    #     a multiple of 8 nor of g — validates the no-pad / no-slice design.
    x2 = jax.random.uniform(jax.random.PRNGKey(1), (19,), dtype=jnp.float32) * 100.0
    o2 = jax.block_until_ready(positional_embedding_edm(x2, num_channels))
    r2 = _reference(x2, num_channels)
    assert o2.shape == (19, num_channels), o2.shape
    assert jnp.allclose(o2, r2, atol=1e-3, rtol=1e-3), "partial-block path mismatch"

    # (3) Wide-channel simple path (output already lane-dense): C=256.
    x3 = jax.random.uniform(jax.random.PRNGKey(2), (24,), dtype=jnp.float32) * 100.0
    o3 = jax.block_until_ready(positional_embedding_edm(x3, 256))
    r3 = _reference(x3, 256)
    assert o3.shape == (24, 256), o3.shape
    assert jnp.allclose(o3, r3, atol=1e-3, rtol=1e-3), "wide-channel path mismatch"

    print("KERNEL_OK")
</pallas_src>

<mosaic_0001>
module attributes {stable_mosaic.version = 11 : i64} {
  func.func @_edm_grouped_kernel(%arg0: i32, %arg1: memref<8x4xf32, #tpu.memory_space<vmem>>, %arg2: memref<4x128xf32, #tpu.memory_space<vmem>>, %arg3: memref<8x128xf32, #tpu.memory_space<vmem>>) attributes {dimension_semantics = [#tpu.dimension_semantics<parallel>], iteration_bounds = array<i64: 1>, scalar_prefetch = 0 : i64, scratch_operands = 0 : i64, tpu.core_type = #tpu.core_type<tc>, window_params = [{transform_indices = @transform_0, window_bounds = array<i64: 8, 4>}, {pipeline_mode = #tpu.pipeline_mode<synchronous>, transform_indices = @transform_1, window_bounds = array<i64: 4, 128>}, {transform_indices = @transform_2, window_bounds = array<i64: 8, 128>}]} {
    %c0 = arith.constant 0 : index
    %c0_0 = arith.constant 0 : index
    %0 = vector.load %arg1[%c0, %c0_0] : memref<8x4xf32, #tpu.memory_space<vmem>>, vector<8x4xf32>
    %c0_1 = arith.constant 0 : index
    %c0_2 = arith.constant 0 : index
    %1 = vector.load %arg2[%c0_1, %c0_2] : memref<4x128xf32, #tpu.memory_space<vmem>>, vector<4x128xf32>
    %cst = arith.constant dense<0.000000e+00> : vector<8x128xf32>
    %2 = tpu.matmul %0, %1, %cst {dimension_numbers = #tpu.dot_dimension_numbers<[1], [0], [0], [1], [0, 0, 1, 1], [], []>, precision = #tpu.contract_precision<fp32>} : vector<8x4xf32>, vector<4x128xf32>, vector<8x128xf32> -> vector<8x128xf32>
    %3 = tpu.iota {dimensions = array<i32: 1>} : vector<1x128xi32>
    %c32_i32 = arith.constant 32 : i32
    %c0_i32 = arith.constant 0 : i32
    %4 = arith.cmpi eq, %c32_i32, %c0_i32 : i32
    %c1_i32 = arith.constant 1 : i32
    %5 = arith.select %4, %c1_i32, %c32_i32 : i32
    %6 = vector.broadcast %5 : i32 to vector<1x128xi32>
    %7 = arith.remsi %3, %6 : vector<1x128xi32>
    %c0_i32_3 = arith.constant 0 : i32
    %8 = vector.broadcast %c0_i32_3 : i32 to vector<1x128xi32>
    %9 = arith.cmpi ne, %7, %8 : vector<1x128xi32>
    %c0_i32_4 = arith.constant 0 : i32
    %10 = vector.broadcast %c0_i32_4 : i32 to vector<1x128xi32>
    %11 = arith.cmpi slt, %7, %10 : vector<1x128xi32>
    %c0_i32_5 = arith.constant 0 : i32
    %12 = arith.cmpi slt, %5, %c0_i32_5 : i32
    %13 = vector.broadcast %12 : i1 to vector<1x128xi1>
    %14 = vector.broadcast %13 : vector<1x128xi1> to vector<1x128xi1>
    %15 = arith.xori %11, %14 : vector<1x128xi1>
    %16 = arith.andi %15, %9 : vector<1x128xi1>
    %17 = vector.broadcast %5 : i32 to vector<1x128xi32>
    %18 = arith.addi %7, %17 : vector<1x128xi32>
    %19 = arith.select %16, %18, %7 : vector<1x128xi1>, vector<1x128xi32>
    %c16_i32 = arith.constant 16 : i32
    %20 = vector.broadcast %c16_i32 : i32 to vector<1x128xi32>
    %21 = arith.cmpi sge, %19, %20 : vector<1x128xi32>
    %cst_6 = arith.constant -1.57079637 : f32
    %cst_7 = arith.constant 0.000000e+00 : f32
    %22 = vector.broadcast %cst_6 : f32 to vector<1x128xf32>
    %23 = vector.broadcast %cst_7 : f32 to vector<1x128xf32>
    %24 = arith.select %21, %22, %23 : vector<1x128xi1>, vector<1x128xf32>
    %25 = vector.broadcast %24 : vector<1x128xf32> to vector<8x128xf32>
    %26 = arith.addf %2, %25 : vector<8x128xf32>
    %27 = math.cos %26 : vector<8x128xf32>
    %c0_8 = arith.constant 0 : index
    %c0_9 = arith.constant 0 : index
    %28 = vector.load %arg3[%c0_8, %c0_9] : memref<8x128xf32, #tpu.memory_space<vmem>>, vector<8x128xf32>
    tpu.vector_store %arg3[%c0_8, %c0_9], %27 {strides = array<i32>} : memref<8x128xf32, #tpu.memory_space<vmem>>, vector<8x128xf32>,
    return
  }
  func.func @transform_0(%arg0: i32) -> (i32, i32) {
    %c0_i32 = arith.constant 0 : i32
    %c0_i32_0 = arith.constant 0 : i32
    return %arg0, %c0_i32 : i32, i32
  }
  func.func @transform_1(%arg0: i32) -> (i32, i32) {
    %c0_i32 = arith.constant 0 : i32
    %c0_i32_0 = arith.constant 0 : i32
    %c0_i32_1 = arith.constant 0 : i32
    return %c0_i32, %c0_i32_0 : i32, i32
  }
  func.func @transform_2(%arg0: i32) -> (i32, i32) {
    %c0_i32 = arith.constant 0 : i32
    %c0_i32_0 = arith.constant 0 : i32
    return %arg0, %c0_i32 : i32, i32
  }
}

</mosaic_0001>

<bundles_post_ra>
// kernel: tpu_custom_call.1
= control target key start
LH: loop header
LB: loop body
LE: loop exit
PB: predicated region body
PF: predicated region fallthrough
CT: control target
= control target key end

     0   :  { %7 = vsyncpa [#allocation3], 0  ;;  %s590_s0 = inlined_call_operand.hbm [shape: f32[4,4], index: 0, kind: input, shape index: {}]   ;;  %s591_s1 = inlined_call_operand.hbm [shape: f32[4,128], index: 1, kind: input, shape index: {}]   ;;  %s592_s2 = inlined_call_operand.hbm [shape: f32[4,128], index: 2, kind: output, shape index: {}]  }
   0x1   :  { %8 = vsyncpa [#allocation6], 0 }
   0x2   :  { %9 = vsyncpa [#allocation4], 0 }
   0x3   :  { %13 = vsyncadd [#allocation3], 64  ;;  %s14_s11 = sshll.u32 %s590_s0, 4  ;;  %s483_s12 = smov [#allocation2]   ;;  %s15_s11 = int_to_ptr.hbm [resolvable:$true] %s14_s11 }
   0x4   :  { %s16_s13 = sshll.u32 %s483_s12, 4  ;;  %s28_s16 = sshll.u32 %s591_s1, 4  ;;  %s17_s13 = int_to_ptr.vmem [resolvable:$true] %s16_s13  ;;  %s29_s16 = int_to_ptr.hbm [resolvable:$true] %s28_s16 }
   0x5   :  { %s484_s17 = smov 64   ;;  %s485_s18 = smov 4  }
   0x6   :  { %22 = dma.hbm_to_vmem [thread:$0]  %s15_s11, 64, %s17_s13, [#allocation3], %s484_s17, %s484_s17, %s485_s18  }
   0x7   :  { %s486_s19 = smov [#allocation5]  }
   0x8   :  { %s30_s20 = sshll.u32 %s486_s19, 4  ;;  %s31_s20 = int_to_ptr.vmem [resolvable:$true] %s30_s20 }
   0x9   :  { %33 = dma.hbm_to_vmem [thread:$0]  %s29_s16, 64, %s31_s20, [#allocation6]  }
   0xa   :  { %477 = dma.done.wait [#allocation3], 128  }
   0xb   :  { %478 = vsyncadd [#allocation3], 4294967168 }
   0xc   :  { %479 = dma.done.wait [#allocation6], 64  }
   0xd   :  { %480 = vsyncadd [#allocation6], 4294967232  ;;  %vm64_vm0 = vcmask 1043456   ;;  %vm60_vm1 = vcmask 31744   ;;  %v43_v0 = vld [vmem:[#allocation5] sm:$0xf]  ;;  %v44_v14 = vlaneseq }
   0xe   :  { %v42_v1 = vld [vmem:[#allocation2] sm:$0xff]  ;;  %v66_v2 = vsel %vm64_vm0, %v43_v0, 0  ;;  %v487_v17 = vmov 0.0   ;;  %v488_v42 = vmov 683565275  }
   0xf   :  { %v62_v3 = vsel %vm60_vm1, %v42_v1, 0  ;;  %v83_v4 = vand.u32 4294901760, %v66_v2  ;;  %v45_v15 = vand.u32 127, %v44_v14  ;;  %v489_v44 = vmov 2475754826  }
  0x10   :  { %v85_v5 = vand.u32 4294901760, %v62_v3  ;;  %v490_v47 = vmov 2131351028   ;;  %v491_v50 = vmov 2102212464  }
  0x11   :  { %v110_v6 = vsub.f32 %v66_v2, %v83_v4  ;;  %84 = vmatpush.msra.mxu0 %v83_v4  ;;  %160 = vmatpush.msra.mxu3 %v83_v4  ;;  %v50_v16 = vand.u32 31, %v45_v15  ;;  %v492_v53 = vmov 920167782   ;;  %v493_v56 = vmov 1326507024  }
  0x12   :  { %v86_v7 = vsub.f32 %v62_v3, %v85_v5 }
  0x13   :  { %137 = vmatpush.msra.mxu2 %v110_v6  ;;  %v111_v9 = vand.u32 4294901760, %v110_v6  ;;  %vm58_vm2 = vcmp.ge.s32.totalorder %v50_v16, 16 }
  0x14   :  { %v87_v8 = vand.u32 4294901760, %v86_v7  ;;  %140 = vmatmul.f32.vlgmr.msra.gmra.mxu2 %v86_v7  ;;  %v59_v18 = vsel %vm58_vm2, -1.5707964, %v487_v17 }
  0x15   :  { %186 = vmatpush.msrb.mxu0 %v111_v9  ;;  %v112_v11 = vsub.f32 %v110_v6, %v111_v9 }
  0x16   :  { %v88_v10 = vsub.f32 %v86_v7, %v87_v8  ;;  %164 = vmatmul.f32.vlgmr.msra.gmra.mxu3 %v87_v8 }
  0x17   :  { %v113_v13 = vand.u32 4294901760, %v112_v11 }
  0x18   :  { %v89_v12 = vand.u32 4294901760, %v88_v10 }
  0x19   :  { %114 = vmatpush.msra.mxu1 %v113_v13 }
  0x1a   :  { %90 = vmatmul.f32.vlgmr.msra.gmra.mxu0 %v89_v12  ;;  %116 = vmatmul.f32.vlgmr.msra.gmra.mxu1 %v85_v5 }
  0x1b   :  { %208 = vmatpush.msrb.mxu1 %v83_v4 }
  0x22   :  { %188 = vmatmul.f32.vlgmr.msrb.gmra.mxu0 %v85_v5  ;;  %210 = vmatmul.f32.vlgmr.msrb.gmra.mxu1 %v85_v5 }
  0x97   :  { %v91_v19 = vpop.f32.mrf.mxu0  ;;  %v117_v21 = vpop.f32.mrf.mxu1 }
  0x98   :  { %v92_v20 = vadd.f32 %v91_v19, %v59_v18  ;;  %v141_v22 = vpop.f32.mrf.mxu2 }
  0x99   :  { %v165_v24 = vpop.f32.mrf.mxu3 }
  0x9a   :  { %v118_v23 = vadd.f32 %v117_v21, %v92_v20 }
  0x9c   :  { %v142_v25 = vadd.f32 %v141_v22, %v118_v23 }
  0x9e   :  { %v166_v26 = vadd.f32 %v165_v24, %v142_v25 }
  0x9f   :  { %v189_v27 = vpop.f32.mrf.mxu0  ;;  %v211_v29 = vpop.f32.mrf.mxu1 }
  0xa0   :  { %v190_v28 = vadd.f32 %v189_v27, %v166_v26  ;;  %v494_v26 = vmov 0  }
  0xa2   :  { %v520_v30 = vadd.f32 %v211_v29, %v190_v28 }
  0xa4   :  { %v217_v31 = vand.u32 2139095040, %v520_v30  ;;  %v214_v34 = vand.u32 2147483647, %v520_v30  ;;  %vm216_vm15 = vcmp.lt.s32.totalorder %v520_v30, 0 }
  0xa6   :  { %v218_v32 = vshrl.u32 %v217_v31, 23  ;;  %v221_v36 = vand.u32 8388607, %v214_v34  ;;  %vm574_vm0 = vcmp.le.f32.partialorder %v214_v34, 0.7853982 }
  0xa8   :  { %v389_v33 = vadd.s32 4294967169, %v218_v32  ;;  %v222_v40 = vor.u32 8388608, %v221_v36 }
  0xaa   :  { %v224_v35 = vadd.s32 1, %v389_v33  ;;  %v537_v63 = vshll.u32 %v222_v40, 8 }
  0xac   :  { %vm225_vm3 = vcmp.gt.s32.totalorder %v224_v35, 0  ;;  %v263_v8 = vand.u32 65535, %v537_v63  ;;  %v264_v9 = vshrl.u32 %v537_v63, 16 }
  0xad   :  { %v226_v37 = vsel %vm225_vm3, %v224_v35, 0 }
  0xae   :  { %v228_v38 = vand.u32 31, %v226_v37  ;;  %v528_v41 = vshrl.u32 %v226_v37, 5 }
  0xb0   :  { %v526_v39 = vsub.s32 32, %v228_v38  ;;  %v231_v43 = vshll.u32 %v488_v42, %v228_v38  ;;  %v234_v45 = vshll.u32 %v489_v44, %v228_v38  ;;  %v237_v49 = vshll.u32 %v490_v47, %v228_v38 }
  0xb1   :  { %v240_v52 = vshll.u32 %v491_v50, %v228_v38  ;;  %v243_v55 = vshll.u32 %v492_v53, %v228_v38  ;;  %vm246_vm4 = vcmp.lt.s32.totalorder %v528_v41, 1  ;;  %vm249_vm5 = vcmp.lt.s32.totalorder %v528_v41, 4 }
  0xb2   :  { %v232_v46 = vshrl.u32 %v489_v44, %v526_v39  ;;  %v235_v48 = vshrl.u32 %v490_v47, %v526_v39  ;;  %v238_v51 = vshrl.u32 %v491_v50, %v526_v39  ;;  %v241_v54 = vshrl.u32 %v492_v53, %v526_v39 }
  0xb3   :  { %v244_v57 = vshrl.u32 %v493_v56, %v526_v39  ;;  %vm248_vm6 = vcmp.lt.s32.totalorder %v528_v41, 3  ;;  %vm247_vm7 = vcmp.lt.s32.totalorder %v528_v41, 2  ;;  %v230_v37 = vshrl.u32 %v488_v42, %v526_v39 }
  0xb4   :  { %v233_v58 = vor.u32 %v232_v46, %v231_v43  ;;  %v236_v59 = vor.u32 %v235_v48, %v234_v45  ;;  %v239_v60 = vor.u32 %v238_v51, %v237_v49  ;;  %v242_v61 = vor.u32 %v241_v54, %v240_v52 }
  0xb5   :  { %v245_v62 = vor.u32 %v244_v57, %v243_v55 }
  0xb6   :  { %v254_v0 = vsel %vm246_vm4, %v233_v58, %v236_v59  ;;  %v258_v1 = vsel %vm246_vm4, %v236_v59, %v239_v60  ;;  %v255_v2 = vsel %vm249_vm5, %v242_v61, 920167782  ;;  %v251_v33 = vsel %vm249_vm5, %v239_v60, 2102212464 }
  0xb7   :  { %v259_v3 = vsel %vm249_vm5, %v245_v62, 1326507024  ;;  %v256_v4 = vsel %vm248_vm6, %v239_v60, %v255_v2  ;;  %v250_v46 = vsel %vm246_vm4, %v230_v37, %v233_v58  ;;  %v252_v47 = vsel %vm248_vm6, %v236_v59, %v251_v33 }
  0xb8   :  { %v260_v5 = vsel %vm248_vm6, %v242_v61, %v259_v3  ;;  %v257_v6 = vsel %vm247_vm7, %v254_v0, %v256_v4  ;;  %v253_v39 = vsel %vm247_vm7, %v250_v46, %v252_v47  ;;  %vm357_vm4 = vweird.f32 %v520_v30 }
  0xb9   :  { %v261_v7 = vsel %vm247_vm7, %v258_v1, %v260_v5  ;;  %v287_v12 = vand.u32 65535, %v257_v6  ;;  %v288_v13 = vshrl.u32 %v257_v6, 16  ;;  %v307_v55 = vmul.u32 %v537_v63, %v253_v39 }
  0xba   :  { %v265_v10 = vand.u32 65535, %v261_v7  ;;  %v266_v11 = vshrl.u32 %v261_v7, 16 }
  0xbb   :  { %v290_v16 = vmul.u32 %v288_v13, %v263_v8  ;;  %v291_v17 = vmul.u32 %v287_v12, %v264_v9  ;;  %v289_v21 = vmul.u32 %v287_v12, %v263_v8  ;;  %v292_v25 = vmul.u32 %v288_v13, %v264_v9 }
  0xbc   :  { %v268_v14 = vmul.u32 %v266_v11, %v263_v8  ;;  %v269_v15 = vmul.u32 %v265_v10, %v264_v9  ;;  %v267_v18 = vmul.u32 %v265_v10, %v263_v8  ;;  %v270_v20 = vmul.u32 %v266_v11, %v264_v9 }
  0xbd   :  { %v293_v22 = vshll.u32 %v290_v16, 16  ;;  %v295_v28 = vshll.u32 %v291_v17, 16  ;;  %v294_v44 = vshrl.u32 %v290_v16, 16  ;;  %v296_v50 = vshrl.u32 %v291_v17, 16 }
  0xbe   :  { %v271_v19 = vshll.u32 %v268_v14, 16  ;;  %v273_v23 = vshll.u32 %v269_v15, 16  ;;  %v272_v38 = vshrl.u32 %v268_v14, 16  ;;  %v274_v48 = vshrl.u32 %v269_v15, 16 }
  0xbf   :  { %vm297_vm9 = vc.u32 %v289_v21, %v293_v22  ;;  %v299_v29 = vadd.s32 %v293_v22, %v289_v21 }
  0xc0   :  { %vm275_vm8 = vc.u32 %v267_v18, %v271_v19  ;;  %v277_v24 = vadd.s32 %v271_v19, %v267_v18  ;;  %v298_v32 = vsel %vm297_vm9, 1, %v494_v26 }
  0xc1   :  { %v276_v27 = vsel %vm275_vm8, 1, %v494_v26  ;;  %v300_v36 = vadd.s32 %v298_v32, %v292_v25  ;;  %vm301_vm11 = vc.u32 %v299_v29, %v295_v28  ;;  %v303_v53 = vadd.s32 %v299_v29, %v295_v28 }
  0xc2   :  { %v278_v31 = vadd.s32 %v276_v27, %v270_v20  ;;  %vm279_vm10 = vc.u32 %v277_v24, %v273_v23  ;;  %v302_v43 = vsel %vm301_vm11, 1, %v494_v26 }
  0xc3   :  { %v280_v35 = vsel %vm279_vm10, 1, %v494_v26  ;;  %v304_v45 = vadd.s32 %v302_v43, %v300_v36 }
  0xc4   :  { %v282_v40 = vadd.s32 %v280_v35, %v278_v31 }
  0xc5   :  { %v305_v51 = vadd.s32 %v304_v45, %v294_v44 }
  0xc6   :  { %v283_v49 = vadd.s32 %v282_v40, %v272_v38 }
  0xc7   :  { %v306_v42 = vadd.s32 %v305_v51, %v296_v50 }
  0xc8   :  { %v284_v52 = vadd.s32 %v283_v49, %v274_v48 }
  0xc9   :  { %v310_v54 = vadd.s32 1, %v306_v42 }
  0xca   :  { %vm309_vm12 = vc.u32 %v284_v52, %v303_v53  ;;  %v308_v41 = vadd.s32 %v303_v53, %v284_v52 }
  0xcb   :  { %v311_v56 = vsel %vm309_vm12, %v310_v54, %v306_v42 }
  0xcc   :  { %v312_v57 = vadd.s32 %v311_v56, %v307_v55 }
  0xce   :  { %v313_v58 = vadd.s32 536870912, %v312_v57 }
  0xd0   :  { %v314_v60 = vshrl.u32 %v313_v58, 30 }
  0xd2   :  { %v315_v61 = vshll.u32 %v314_v60, 30  ;;  %v338_v21 = vsub.s32 4, %v314_v60 }
  0xd4   :  { %v316_v59 = vsub.s32 %v312_v57, %v315_v61  ;;  %v339_v26 = vsel %vm216_vm15, %v338_v21, %v314_v60 }
  0xd5   :  { %v341_v34 = vsel %vm574_vm0, 0, %v339_v26 }
  0xd6   :  { %vm317_vm13 = vcmp.lt.s32.totalorder %v316_v59, 0  ;;  %v318_v62 = vsub.s32 0, %v316_v59  ;;  %v358_v35 = vand.u32 3, %v341_v34 }
  0xd8   :  { %v319_v0 = vsel %vm317_vm13, %v318_v62, %v316_v59  ;;  %vm360_vm1 = vcmp.eq.s32.totalorder %v358_v35, 0  ;;  %vm363_vm2 = vcmp.eq.s32.totalorder %v358_v35, 2  ;;  %vm359_vm3 = vcmp.lt.s32.totalorder %v358_v35, 2 }
  0xd9   :  { %v320_v1 = vclz %v319_v0 }
  0xdb   :  { %v390_v2 = vadd.s32 4294967294, %v320_v1 }
  0xdd   :  { %vm391_vm14 = vcmp.lt.s32.totalorder %v390_v2, 0 }
  0xde   :  { %v323_v3 = vsel %vm391_vm14, 0, %v390_v2 }
  0xdf   :  { %v324_v4 = vsub.s32 32, %v323_v3  ;;  %v328_v5 = vsub.s32 4294967266, %v323_v3  ;;  %v325_v6 = vshll.u32 %v316_v59, %v323_v3 }
  0xe1   :  { %v326_v7 = vshrl.u32 %v308_v41, %v324_v4  ;;  %v329_v8 = vadd.s32 127, %v328_v5 }
  0xe3   :  { %v327_v63 = vor.u32 %v326_v7, %v325_v6  ;;  %v330_v9 = vshll.u32 %v329_v8, 23 }
  0xe5   :  { %v331_v10 = vor.u32 4788187, %v330_v9  ;;  %v334_v12 = vcvt.s32.f32 %v327_v63 }
  0xe7   :  { %v332_v11 = vand.u32 2147483647, %v331_v10 }
  0xe9   :  { %v335_v13 = vmul.f32 %v334_v12, %v332_v11 }
  0xeb   :  { %v336_v14 = vxor.u32 2147483648, %v335_v13 }
  0xed   :  { %v337_v16 = vsel %vm216_vm15, %v336_v14, %v335_v13 }
  0xee   :  { %v340_v17 = vsel %vm574_vm0, %v520_v30, %v337_v16 }
  0xef   :  { %v342_v18 = vmul.f32 %v340_v17, %v340_v17 }
  0xf1   :  { %v343_v19 = vmul.f32 -0.001358992, %v342_v18  ;;  %v350_v20 = vmul.f32 -0.00019511016, %v342_v18 }
  0xf3   :  { %v344_v22 = vadd.f32 0.041655596, %v343_v19  ;;  %v351_v23 = vadd.f32 0.008332121, %v350_v20 }
  0xf5   :  { %v345_v24 = vmul.f32 %v344_v22, %v342_v18  ;;  %v352_v25 = vmul.f32 %v351_v23, %v342_v18 }
  0xf7   :  { %v346_v27 = vadd.f32 -0.4999988, %v345_v24  ;;  %v353_v28 = vadd.f32 -0.16666654, %v352_v25 }
  0xf9   :  { %v347_v29 = vmul.f32 %v346_v27, %v342_v18  ;;  %v354_v31 = vmul.f32 %v353_v28, %v342_v18 }
  0xfb   :  { %v348_v32 = vadd.f32 1.0, %v347_v29  ;;  %v355_v33 = vadd.f32 1.0, %v354_v31 }
  0xfd   :  { %v356_v36 = vmul.f32 %v355_v33, %v340_v17  ;;  %v364_v37 = vxor.u32 2147483648, %v348_v32 }
  0xff   :  { %v361_v38 = vxor.u32 2147483648, %v356_v36  ;;  %v365_v43 = vsel %vm363_vm2, %v364_v37, %v356_v36 }
 0x101   :  { %v362_v40 = vsel %vm360_vm1, %v348_v32, %v361_v38 }
 0x102   :  { %v366_v44 = vsel %vm359_vm3, %v362_v40, %v365_v43 }
 0x103   :  { %v367_v45 = vsel %vm357_vm4, nan, %v366_v44 }
 0x104   :  { %368 = vst [vmem:[#allocation7] sm:$0xff] %v367_v45 }
 0x105   :  { %372 = vsyncadd [#allocation4], 64  ;;  %s375_s21 = sshll.u32 %s592_s2, 4  ;;  %s495_s22 = smov [#allocation7]   ;;  %s376_s21 = int_to_ptr.hbm [resolvable:$true] %s375_s21 }
 0x106   :  { %s373_s23 = sshll.u32 %s495_s22, 4  ;;  %s374_s23 = int_to_ptr.vmem [resolvable:$true] %s373_s23 }
 0x107   :  { %381 = dma.vmem_to_hbm [thread:$0]  %s374_s23, 64, %s376_s21, [#allocation4], %s484_s17, %s484_s17, %s485_s18  }
 0x108   :  { %481 = dma.done.wait [#allocation4], 128  }
 0x109   :  { %482 = vsyncadd [#allocation4], 4294967168 }
 0x10a   :  { %386 = vsyncpa [#allocation3], 1 }
 0x10b   :  { %387 = vsyncpa [#allocation6], 1 }
 0x10c   :  { %388 = vsyncpa [#allocation4], 1 }

</bundles_post_ra>
